<compile_context>
chip_gen: v7x
topology: tpu7x:2x2x1
jax: 0.10.0
libtpu: 0.0.40
codegen_flags: <defaults>
</compile_context>

<pallas_src>
import functools

import jax
import jax.numpy as jnp
from jax.experimental import pallas as pl
from jax.experimental.pallas import tpu as pltpu

LN_EPS = 1e-5      # nn.LayerNorm default eps
LANES = 128        # TPU lane count (last-dim tiling)
SUBLANES = 8       # TPU sublane count (second-to-last-dim tiling)


def _round_up(n, m):
    return ((n + m - 1) // m) * m


def _vmem_limit_bytes():
    """Generation-aware scoped-VMEM limit: ~52 MiB on v7x (64 MiB/TC), ~100 MiB on v5e/v6e."""
    try:
        cap = int(pltpu.get_tpu_info().vmem_capacity_bytes)
    except Exception:                      # conservative fallback (v7x per-TC size)
        cap = 64 * 1024 * 1024
    return int(max(32 * 1024 * 1024, min(cap - 12 * 1024 * 1024, 100 * 1024 * 1024)))


# ------------------------------------------------------------------ kernel body

def _mixer_kernel(x_ref, g_ref, b_ref, w1_ref, b1_ref, w2_ref, b2_ref, o_ref,
                  *, d_valid):
    """Fused LayerNorm -> Linear -> ReLU -> Linear -> residual on one row tile.

    The feature axis may be zero-padded from d_valid up to a multiple of 128.
    Invariant: pad lanes of x are zero on input and stay zero on output
    (gamma/beta/W1-rows/W2-cols/b2 are zero-padded), so layers can be chained
    in the padded layout.
    """
    x = x_ref[...].astype(jnp.float32)                       # (tm, Dp)
    inv_d = jnp.float32(1.0 / d_valid)

    # LayerNorm (biased variance, torch semantics). Pad lanes are zero, so the
    # one-pass sums are already exact over the valid lanes -- no lane mask needed.
    mean = jnp.sum(x, axis=-1, keepdims=True) * inv_d
    var = jnp.sum(x * x, axis=-1, keepdims=True) * inv_d - mean * mean
    var = jnp.maximum(var, 0.0)                               # guard 1-pass cancellation
    xn = (x - mean) * jax.lax.rsqrt(var + LN_EPS)
    # gamma/beta pad lanes are zero -> xn pad lanes become exactly zero here.
    xn = xn * g_ref[...].astype(jnp.float32) + b_ref[...].astype(jnp.float32)

    # Linear1 + ReLU: bf16 MXU operands, f32 accumulation.
    h = jnp.dot(xn.astype(jnp.bfloat16), w1_ref[...],
                preferred_element_type=jnp.float32)
    h = jnp.maximum(h + b1_ref[...].astype(jnp.float32), 0.0)   # (tm, Hp)

    # Linear2 (bf16 MXU, f32 acc). Pad columns of W2 / pad lanes of b2 are zero.
    y = jnp.dot(h.astype(jnp.bfloat16), w2_ref[...],
                preferred_element_type=jnp.float32)
    y = y + b2_ref[...].astype(jnp.float32)                   # (tm, Dp)

    # Residual: re-read x from VMEM so the f32 slab used for LN does not stay
    # live across both matmuls (reduces VMEM pressure / spill at large tm).
    o_ref[...] = (x_ref[...].astype(jnp.float32) + y).astype(o_ref.dtype)


# ------------------------------------------------------------ padded-layout core

def _feature_mixer_padded(x2d, g2, be2, w1p, b1p, w2p, b2p, *, d_valid, tm):
    """One mixer layer on already-padded (Mp, Dp) activations. No pad/unpad here."""
    Mp, Dp = x2d.shape
    Hp = w1p.shape[1]
    assert Mp % SUBLANES == 0 and Dp % LANES == 0 and Hp % LANES == 0

    tm_eff = min(tm, Mp)                       # never request a block taller than the array
    grid = (pl.cdiv(Mp, tm_eff),)              # ragged last row tile handled by Pallas

    # Grid-invariant parameters: same full block every step. Constant-index blocks
    # are never re-DMA'd; Buffered(1) additionally drops the default double buffer,
    # halving their VMEM footprint (matters on v7x's 64 MiB VMEM with large tm).
    def _param(shape):
        return pl.BlockSpec(shape, lambda i: (0, 0), pipeline_mode=pl.Buffered(1))

    # TODO(synk): for very large in_dim/hidden (>= ~2048 on v7x) the fully resident
    # W1/W2 blocks stop fitting; add an "arbitrary" grid axis over Hp and accumulate
    # y chunk-by-chunk into an f32 VMEM scratch with pl.when init/finalize.

    itemsize = jnp.dtype(x2d.dtype).itemsize
    cost = pl.CostEstimate(
        flops=4 * Mp * Dp * Hp,                      # two (Mp,Dp)x(Dp,Hp)-class matmuls
        transcendentals=Mp,                          # one rsqrt per row
        bytes_accessed=2 * Mp * Dp * itemsize        # x in + out
        + 2 * (Dp * Hp + Hp * Dp)                    # bf16 W1 + W2
        + 4 * (3 * Dp + Hp),                         # f32 gamma/beta/b2 + b1
    )

    return pl.pallas_call(
        functools.partial(_mixer_kernel, d_valid=d_valid),
        out_shape=jax.ShapeDtypeStruct((Mp, Dp), x2d.dtype),
        grid_spec=pl.GridSpec(
            grid=grid,
            in_specs=[
                pl.BlockSpec((tm_eff, Dp), lambda i: (i, 0)),   # x row tile (pipelined)
                _param((1, Dp)),       # LN gamma
                _param((1, Dp)),       # LN beta
                _param((Dp, Hp)),      # W1 (in, out), bf16
                _param((1, Hp)),       # b1
                _param((Hp, Dp)),      # W2 (in, out), bf16
                _param((1, Dp)),       # b2
            ],
            out_specs=pl.BlockSpec((tm_eff, Dp), lambda i: (i, 0)),
        ),
        compiler_params=pltpu.CompilerParams(
            dimension_semantics=("parallel",),   # row tiles shard across TCs (v7x megacore)
            vmem_limit_bytes=_vmem_limit_bytes(),
        ),
        cost_estimate=cost,
    )(x2d, g2, be2, w1p, b1p, w2p, b2p)


# ------------------------------------------------------------------ public API

def pad_mixer_params(gamma, beta, w1, b1, w2, b2):
    """Pad one layer's params to lane-dense (128-multiple) shapes; weights -> bf16."""
    D, H = w1.shape
    Dp, Hp = _round_up(D, LANES), _round_up(H, LANES)
    g2 = jnp.pad(gamma.astype(jnp.float32), (0, Dp - D)).reshape(1, Dp)
    be2 = jnp.pad(beta.astype(jnp.float32), (0, Dp - D)).reshape(1, Dp)
    w1p = jnp.pad(w1, ((0, Dp - D), (0, Hp - H))).astype(jnp.bfloat16)
    b1p = jnp.pad(b1.astype(jnp.float32), (0, Hp - H)).reshape(1, Hp)
    w2p = jnp.pad(w2, ((0, Hp - H), (0, Dp - D))).astype(jnp.bfloat16)
    b2p = jnp.pad(b2.astype(jnp.float32), (0, Dp - D)).reshape(1, Dp)
    return g2, be2, w1p, b1p, w2p, b2p


@functools.partial(jax.jit, static_argnames=("tm",))
def feature_mixer_stack(x, layers, *, tm=512):
    """MixVPR mix-depth stack: pad the activations ONCE, run every FeatureMixerLayer
    in the padded (Mp, Dp) layout, and slice ONCE at the end -- no per-layer HBM
    pad/unpad round trips.

    x: (B, S, D); layers: sequence of (gamma, beta, w1, b1, w2, b2).
    """
    B, S, D = x.shape
    M = B * S
    Dp = _round_up(D, LANES)
    Mp = _round_up(M, SUBLANES)     # minimal sublane alignment only; rows are NOT padded to tm

    x2d = x.reshape(M, D)
    if (Mp, Dp) != (M, D):
        # Single pad for the whole stack; pad lanes are zero, which the kernel's
        # LayerNorm relies on (and which every layer preserves on output).
        x2d = jnp.pad(x2d, ((0, Mp - M), (0, Dp - D)))

    for p in layers:
        x2d = _feature_mixer_padded(x2d, *pad_mixer_params(*p), d_valid=D, tm=tm)

    if (Mp, Dp) != (M, D):
        x2d = x2d[:M, :D]           # single slice for the whole stack
    return x2d.reshape(B, S, D)


def feature_mixer_layer(x, gamma, beta, w1, b1, w2, b2, *, tm=512):
    """Single FeatureMixerLayer: x + Linear2(ReLU(Linear1(LayerNorm(x)))), x: (B, S, D)."""
    return feature_mixer_stack(x, ((gamma, beta, w1, b1, w2, b2),), tm=tm)


# ---------------------------------------------------------------- init / reference

def init_params(key, in_dim, mlp_ratio=1, dtype=jnp.float32):
    """Deterministic parameter init matching the module's __init__ semantics."""
    hidden = int(in_dim * mlp_ratio)
    k1, k2 = jax.random.split(key)
    # nn.init.trunc_normal_(std=0.02) ~ truncated normal in [-2, 2] * std
    w1 = (jax.random.truncated_normal(k1, -2.0, 2.0, (in_dim, hidden)) * 0.02).astype(dtype)
    w2 = (jax.random.truncated_normal(k2, -2.0, 2.0, (hidden, in_dim)) * 0.02).astype(dtype)
    b1 = jnp.zeros((hidden,), dtype)
    b2 = jnp.zeros((in_dim,), dtype)
    gamma = jnp.ones((in_dim,), dtype)   # nn.LayerNorm default affine init
    beta = jnp.zeros((in_dim,), dtype)
    return gamma, beta, w1, b1, w2, b2


def _reference(x, gamma, beta, w1, b1, w2, b2):
    """Pure-JAX f32 reference matching the PyTorch module."""
    xf = x.astype(jnp.float32)
    mean = jnp.mean(xf, axis=-1, keepdims=True)
    var = jnp.mean((xf - mean) ** 2, axis=-1, keepdims=True)
    xn = (xf - mean) / jnp.sqrt(var + LN_EPS) * gamma + beta
    h = jnp.maximum(xn @ w1 + b1, 0.0)
    y = h @ w2 + b2
    return (xf + y).astype(x.dtype)


if __name__ == "__main__":
    B, S, D = 2, 16, 32      # batch, spatial tokens, in_dim
    mlp_ratio = 1

    key = jax.random.PRNGKey(0)
    kx, k1, k2 = jax.random.split(key, 3)
    x = jax.random.normal(kx, (B, S, D), dtype=jnp.float32)
    params0 = init_params(k1, D, mlp_ratio)
    params1 = init_params(k2, D, mlp_ratio)

    # Single layer.
    out = feature_mixer_layer(x, *params0)
    jax.block_until_ready(out)
    ref = _reference(x, *params0)
    assert out.shape == x.shape and out.dtype == x.dtype
    # Kernel uses bf16 MXU operands (f32 accumulation); bf16-level tolerance.
    assert jnp.allclose(out, ref, atol=2e-2, rtol=2e-2), "single-layer mismatch vs reference"

    # Two stacked layers through the pad-once / slice-once path (MixVPR mix_depth usage).
    out2 = feature_mixer_stack(x, (params0, params1))
    jax.block_until_ready(out2)
    ref2 = _reference(_reference(x, *params0), *params1)
    assert jnp.allclose(out2, ref2, atol=2e-2, rtol=2e-2), "stacked mismatch vs reference"

    print("KERNEL_OK")
</pallas_src>

<mosaic_0001>
module attributes {stable_mosaic.version = 11 : i64} {
  func.func @_mixer_kernel(%arg0: i32, %arg1: memref<32x128xf32, #tpu.memory_space<vmem>>, %arg2: memref<1x128xf32, #tpu.memory_space<vmem>>, %arg3: memref<1x128xf32, #tpu.memory_space<vmem>>, %arg4: memref<128x128xbf16, #tpu.memory_space<vmem>>, %arg5: memref<1x128xf32, #tpu.memory_space<vmem>>, %arg6: memref<128x128xbf16, #tpu.memory_space<vmem>>, %arg7: memref<1x128xf32, #tpu.memory_space<vmem>>, %arg8: memref<32x128xf32, #tpu.memory_space<vmem>>) attributes {dimension_semantics = [#tpu.dimension_semantics<parallel>], iteration_bounds = array<i64: 1>, scalar_prefetch = 0 : i64, scratch_operands = 0 : i64, tpu.core_type = #tpu.core_type<tc>, window_params = [{transform_indices = @transform_0, window_bounds = array<i64: 32, 128>}, {pipeline_mode = #tpu.pipeline_mode<synchronous>, transform_indices = @transform_1, window_bounds = array<i64: 1, 128>}, {pipeline_mode = #tpu.pipeline_mode<synchronous>, transform_indices = @transform_2, window_bounds = array<i64: 1, 128>}, {pipeline_mode = #tpu.pipeline_mode<synchronous>, transform_indices = @transform_3, window_bounds = array<i64: 128, 128>}, {pipeline_mode = #tpu.pipeline_mode<synchronous>, transform_indices = @transform_4, window_bounds = array<i64: 1, 128>}, {pipeline_mode = #tpu.pipeline_mode<synchronous>, transform_indices = @transform_5, window_bounds = array<i64: 128, 128>}, {pipeline_mode = #tpu.pipeline_mode<synchronous>, transform_indices = @transform_6, window_bounds = array<i64: 1, 128>}, {transform_indices = @transform_7, window_bounds = array<i64: 32, 128>}]} {
    %c0 = arith.constant 0 : index
    %c0_0 = arith.constant 0 : index
    %0 = vector.load %arg1[%c0, %c0_0] : memref<32x128xf32, #tpu.memory_space<vmem>>, vector<32x128xf32>
    %cst = arith.constant dense<0.000000e+00> : vector<32xf32>
    %1 = vector.multi_reduction <add>, %0, %cst [1] : vector<32x128xf32> to vector<32xf32>
    %2 = vector.shape_cast %1 : vector<32xf32> to vector<32x1xf32>
    %cst_1 = arith.constant 3.125000e-02 : f32
    %3 = vector.broadcast %cst_1 : f32 to vector<32x1xf32>
    %4 = arith.mulf %2, %3 : vector<32x1xf32>
    %5 = arith.mulf %0, %0 : vector<32x128xf32>
    %cst_2 = arith.constant dense<0.000000e+00> : vector<32xf32>
    %6 = vector.multi_reduction <add>, %5, %cst_2 [1] : vector<32x128xf32> to vector<32xf32>
    %7 = vector.shape_cast %6 : vector<32xf32> to vector<32x1xf32>
    %cst_3 = arith.constant 3.125000e-02 : f32
    %8 = vector.broadcast %cst_3 : f32 to vector<32x1xf32>
    %9 = arith.mulf %7, %8 : vector<32x1xf32>
    %10 = arith.mulf %4, %4 : vector<32x1xf32>
    %11 = arith.subf %9, %10 : vector<32x1xf32>
    %cst_4 = arith.constant 0.000000e+00 : f32
    %12 = vector.broadcast %cst_4 : f32 to vector<32x1xf32>
    %13 = arith.maximumf %11, %12 : vector<32x1xf32>
    %14 = vector.broadcast %4 : vector<32x1xf32> to vector<32x128xf32>
    %15 = arith.subf %0, %14 : vector<32x128xf32>
    %cst_5 = arith.constant 9.99999974E-6 : f32
    %16 = vector.broadcast %cst_5 : f32 to vector<32x1xf32>
    %17 = arith.addf %13, %16 : vector<32x1xf32>
    %18 = math.rsqrt %17 : vector<32x1xf32>
    %19 = vector.broadcast %18 : vector<32x1xf32> to vector<32x128xf32>
    %20 = arith.mulf %15, %19 : vector<32x128xf32>
    %c0_6 = arith.constant 0 : index
    %c0_7 = arith.constant 0 : index
    %21 = vector.load %arg2[%c0_6, %c0_7] : memref<1x128xf32, #tpu.memory_space<vmem>>, vector<1x128xf32>
    %22 = vector.broadcast %21 : vector<1x128xf32> to vector<32x128xf32>
    %23 = arith.mulf %20, %22 : vector<32x128xf32>
    %c0_8 = arith.constant 0 : index
    %c0_9 = arith.constant 0 : index
    %24 = vector.load %arg3[%c0_8, %c0_9] : memref<1x128xf32, #tpu.memory_space<vmem>>, vector<1x128xf32>
    %25 = vector.broadcast %24 : vector<1x128xf32> to vector<32x128xf32>
    %26 = arith.addf %23, %25 : vector<32x128xf32>
    %27 = arith.truncf %26 : vector<32x128xf32> to vector<32x128xbf16>
    %c0_10 = arith.constant 0 : index
    %c0_11 = arith.constant 0 : index
    %28 = vector.load %arg4[%c0_10, %c0_11] : memref<128x128xbf16, #tpu.memory_space<vmem>>, vector<128x128xbf16>
    %cst_12 = arith.constant dense<0.000000e+00> : vector<32x128xf32>
    %29 = tpu.matmul %27, %28, %cst_12 {dimension_numbers = #tpu.dot_dimension_numbers<[1], [0], [0], [1], [0, 0, 1, 1], [], []>} : vector<32x128xbf16>, vector<128x128xbf16>, vector<32x128xf32> -> vector<32x128xf32>
    %c0_13 = arith.constant 0 : index
    %c0_14 = arith.constant 0 : index
    %30 = vector.load %arg5[%c0_13, %c0_14] : memref<1x128xf32, #tpu.memory_space<vmem>>, vector<1x128xf32>
    %31 = vector.broadcast %30 : vector<1x128xf32> to vector<32x128xf32>
    %32 = arith.addf %29, %31 : vector<32x128xf32>
    %cst_15 = arith.constant 0.000000e+00 : f32
    %33 = vector.broadcast %cst_15 : f32 to vector<32x128xf32>
    %34 = arith.maximumf %32, %33 : vector<32x128xf32>
    %35 = arith.truncf %34 : vector<32x128xf32> to vector<32x128xbf16>
    %c0_16 = arith.constant 0 : index
    %c0_17 = arith.constant 0 : index
    %36 = vector.load %arg6[%c0_16, %c0_17] : memref<128x128xbf16, #tpu.memory_space<vmem>>, vector<128x128xbf16>
    %cst_18 = arith.constant dense<0.000000e+00> : vector<32x128xf32>
    %37 = tpu.matmul %35, %36, %cst_18 {dimension_numbers = #tpu.dot_dimension_numbers<[1], [0], [0], [1], [0, 0, 1, 1], [], []>} : vector<32x128xbf16>, vector<128x128xbf16>, vector<32x128xf32> -> vector<32x128xf32>
    %c0_19 = arith.constant 0 : index
    %c0_20 = arith.constant 0 : index
    %38 = vector.load %arg7[%c0_19, %c0_20] : memref<1x128xf32, #tpu.memory_space<vmem>>, vector<1x128xf32>
    %39 = vector.broadcast %38 : vector<1x128xf32> to vector<32x128xf32>
    %40 = arith.addf %37, %39 : vector<32x128xf32>
    %c0_21 = arith.constant 0 : index
    %c0_22 = arith.constant 0 : index
    %41 = vector.load %arg1[%c0_21, %c0_22] : memref<32x128xf32, #tpu.memory_space<vmem>>, vector<32x128xf32>
    %42 = arith.addf %41, %40 : vector<32x128xf32>
    %c0_23 = arith.constant 0 : index
    %c0_24 = arith.constant 0 : index
    %43 = vector.load %arg8[%c0_23, %c0_24] : memref<32x128xf32, #tpu.memory_space<vmem>>, vector<32x128xf32>
    tpu.vector_store %arg8[%c0_23, %c0_24], %42 {strides = array<i32>} : memref<32x128xf32, #tpu.memory_space<vmem>>, vector<32x128xf32>,
    return
  }
  func.func @transform_0(%arg0: i32) -> (i32, i32) {
    %c0_i32 = arith.constant 0 : i32
    %c0_i32_0 = arith.constant 0 : i32
    return %arg0, %c0_i32 : i32, i32
  }
  func.func @transform_1(%arg0: i32) -> (i32, i32) {
    %c0_i32 = arith.constant 0 : i32
    %c0_i32_0 = arith.constant 0 : i32
    %c0_i32_1 = arith.constant 0 : i32
    return %c0_i32, %c0_i32_0 : i32, i32
  }
  func.func @transform_2(%arg0: i32) -> (i32, i32) {
    %c0_i32 = arith.constant 0 : i32
    %c0_i32_0 = arith.constant 0 : i32
    %c0_i32_1 = arith.constant 0 : i32
    return %c0_i32, %c0_i32_0 : i32, i32
  }
  func.func @transform_3(%arg0: i32) -> (i32, i32) {
    %c0_i32 = arith.constant 0 : i32
    %c0_i32_0 = arith.constant 0 : i32
    %c0_i32_1 = arith.constant 0 : i32
    return %c0_i32, %c0_i32_0 : i32, i32
  }
  func.func @transform_4(%arg0: i32) -> (i32, i32) {
    %c0_i32 = arith.constant 0 : i32
    %c0_i32_0 = arith.constant 0 : i32
    %c0_i32_1 = arith.constant 0 : i32
    return %c0_i32, %c0_i32_0 : i32, i32
  }
  func.func @transform_5(%arg0: i32) -> (i32, i32) {
    %c0_i32 = arith.constant 0 : i32
    %c0_i32_0 = arith.constant 0 : i32
    %c0_i32_1 = arith.constant 0 : i32
    return %c0_i32, %c0_i32_0 : i32, i32
  }
  func.func @transform_6(%arg0: i32) -> (i32, i32) {
    %c0_i32 = arith.constant 0 : i32
    %c0_i32_0 = arith.constant 0 : i32
    %c0_i32_1 = arith.constant 0 : i32
    return %c0_i32, %c0_i32_0 : i32, i32
  }
  func.func @transform_7(%arg0: i32) -> (i32, i32) {
    %c0_i32 = arith.constant 0 : i32
    %c0_i32_0 = arith.constant 0 : i32
    return %arg0, %c0_i32 : i32, i32
  }
}

</mosaic_0001>

<bundles_post_ra>
// kernel: feature_mixer_stack.1
= control target key start
LH: loop header
LB: loop body
LE: loop exit
PB: predicated region body
PF: predicated region fallthrough
CT: control target
= control target key end

     0   :  { %s668_s0 = inlined_call_operand.vmem [shape: f32[32,128], index: 0, kind: input, shape index: {}]   ;;  %s669_s1 = inlined_call_operand.vmem [shape: f32[1,128], index: 1, kind: input, shape index: {}]   ;;  %s670_s2 = inlined_call_operand.vmem [shape: f32[1,128], index: 2, kind: input, shape index: {}]   ;;  %s671_s3 = inlined_call_operand.vmem [shape: bf16[128,128], index: 3, kind: input, shape index: {}]   ;;  %s672_s4 = inlined_call_operand.vmem [shape: f32[1,128], index: 4, kind: input, shape index: {}]   ;;  %s673_s5 = inlined_call_operand.vmem [shape: bf16[128,128], index: 5, kind: input, shape index: {}]   ;;  %s674_s6 = inlined_call_operand.vmem [shape: f32[1,128], index: 6, kind: input, shape index: {}]   ;;  %s675_s7 = inlined_call_operand.hbm [shape: f32[32,128], index: 7, kind: output, shape index: {}]  }
   0x1   :  { %v559_v0 = vld [vmem:[%s668_s0 + $0x10] sm:$0xff]  ;;  %v564_v1 = vld [vmem:[%s668_s0] sm:$0xff]  ;;  %v569_v2 = vld [vmem:[%s668_s0 + $0x18] sm:$0xff] }
   0x2   :  { %36 = vadd.xlane.f32.xlu1 %v559_v0  ;;  %32 = vadd.xlane.f32.xlu0 %v564_v1  ;;  %v576_v3 = vld [vmem:[%s668_s0 + $0x8] sm:$0xff]  ;;  %v44_v5 = vmul.f32 %v564_v1, %v564_v1  ;;  %v47_v6 = vmul.f32 %v569_v2, %v569_v2  ;;  %v46_v7 = vmul.f32 %v559_v0, %v559_v0 }
   0x3   :  { %v45_v4 = vmul.f32 %v576_v3, %v576_v3 }
   0x6   :  { %38 = vadd.xlane.f32.xlu1 %v569_v2  ;;  %34 = vadd.xlane.f32.xlu0 %v576_v3 }
   0xa   :  { %50 = vadd.xlane.f32.xlu1 %v45_v4  ;;  %48 = vadd.xlane.f32.xlu0 %v44_v5 }
   0xb   :  { %12 = vsyncpa [#allocation3], 0  ;;  %v465_v8 = vld [vmem:[%s671_s3] sm:$0xff]   ;;  %v466_v9 = vld [vmem:[%s671_s3 + $0x8] sm:$0xff]  }
   0xc   :  { %422 = vmatprep.subr.bf16.mxu0 %v465_v8  ;;  %v467_v10 = vld [vmem:[%s671_s3 + $0x10] sm:$0xff]   ;;  %v468_v11 = vld [vmem:[%s671_s3 + $0x18] sm:$0xff]   ;;  %v469_v12 = vld [vmem:[%s671_s3 + $0x20] sm:$0xff]  }
   0xd   :  { %423 = vmatpush3.bf16.msra.mxu0 %v465_v8  ;;  %v470_v13 = vld [vmem:[%s671_s3 + $0x28] sm:$0xff]   ;;  %v471_v14 = vld [vmem:[%s671_s3 + $0x30] sm:$0xff]   ;;  %v472_v15 = vld [vmem:[%s671_s3 + $0x38] sm:$0xff]  }
   0xe   :  { %54 = vadd.xlane.f32.xlu1 %v47_v6  ;;  %52 = vadd.xlane.f32.xlu0 %v46_v7  ;;  %v473_v16 = vld [vmem:[%s673_s5] sm:$0xff]   ;;  %v474_v17 = vld [vmem:[%s673_s5 + $0x8] sm:$0xff]   ;;  %v475_v18 = vld [vmem:[%s673_s5 + $0x10] sm:$0xff]  }
   0xf   :  { %424 = vmatprep.subr.bf16.mxu0 %v466_v9  ;;  %442 = vmatprep.subr.bf16.mxu1 %v473_v16  ;;  %v476_v19 = vld [vmem:[%s673_s5 + $0x18] sm:$0xff]   ;;  %v477_v20 = vld [vmem:[%s673_s5 + $0x20] sm:$0xff]   ;;  %v478_v21 = vld [vmem:[%s673_s5 + $0x28] sm:$0xff]  }
  0x10   :  { %443 = vmatpush3.bf16.msra.mxu1 %v473_v16  ;;  %v382_v57 = vld [vmem:[%s669_s1] ss:$0 sm:$0xff] }
  0x11   :  { %425 = vmatpush3.bf16.msra.mxu0 %v466_v9  ;;  %444 = vmatprep.subr.bf16.mxu1 %v474_v17  ;;  %v383_v61 = vld [vmem:[%s670_s2] ss:$0 sm:$0xff] }
  0x12   :  { %426 = vmatprep.subr.bf16.mxu0 %v467_v10 }
  0x14   :  { %445 = vmatpush3.bf16.msra.mxu1 %v474_v17 }
  0x15   :  { %427 = vmatpush3.bf16.msra.mxu0 %v467_v10  ;;  %446 = vmatprep.subr.bf16.mxu1 %v475_v18 }
  0x16   :  { %428 = vmatprep.subr.bf16.mxu0 %v468_v11 }
  0x18   :  { %447 = vmatpush3.bf16.msra.mxu1 %v475_v18  ;;  %v479_v18 = vld [vmem:[%s673_s5 + $0x30] sm:$0xff]  }
  0x19   :  { %429 = vmatpush3.bf16.msra.mxu0 %v468_v11  ;;  %448 = vmatprep.subr.bf16.mxu1 %v476_v19 }
  0x1a   :  { %430 = vmatprep.subr.bf16.mxu0 %v469_v12 }
  0x1c   :  { %449 = vmatpush3.bf16.msra.mxu1 %v476_v19  ;;  %v480_v19 = vld [vmem:[%s673_s5 + $0x38] sm:$0xff]  }
  0x1d   :  { %431 = vmatpush3.bf16.msra.mxu0 %v469_v12  ;;  %450 = vmatprep.subr.bf16.mxu1 %v477_v20 }
  0x1e   :  { %432 = vmatprep.subr.bf16.mxu0 %v470_v13 }
  0x20   :  { %451 = vmatpush3.bf16.msra.mxu1 %v477_v20  ;;  %v384_v20 = vld [vmem:[%s672_s4] ss:$0 sm:$0xff]  ;;  %s513_s4 = smov [#allocation2]  }
  0x21   :  { %433 = vmatpush3.bf16.msra.mxu0 %v470_v13  ;;  %452 = vmatprep.subr.bf16.mxu1 %v478_v21  ;;  %s371_s20 = sshll.u32 %s513_s4, 4  ;;  %s372_s20 = int_to_ptr.vmem [resolvable:$true] %s371_s20 }
  0x22   :  { %434 = vmatprep.subr.bf16.mxu0 %v471_v14  ;;  %p494_p1 = scmp.lt.s32.totalorder %s372_s20, %s372_s20 }
  0x24   :  { %453 = vmatpush3.bf16.msra.mxu1 %v478_v21 }
  0x25   :  { %435 = vmatpush3.bf16.msra.mxu0 %v471_v14  ;;  %454 = vmatprep.subr.bf16.mxu1 %v479_v18 }
  0x26   :  { %436 = vmatprep.subr.bf16.mxu0 %v472_v15 }
  0x28   :  { %455 = vmatpush3.bf16.msra.mxu1 %v479_v18 }
  0x29   :  { %437 = vmatpush3.bf16.msra.mxu0 %v472_v15  ;;  %456 = vmatprep.subr.bf16.mxu1 %v480_v19 }
  0x2c   :  { %457 = vmatpush3.bf16.msra.mxu1 %v480_v19 }
  0x8f   :  { %v37_v22 = vpop.xlane.xlu1 %36  ;;  %v33_v23 = vpop.xlane.xlu0 %32 }
  0x90   :  { %v40_v26 = vmul.f32 0.03125, %v33_v23  ;;  %v42_v28 = vmul.f32 0.03125, %v37_v22 }
  0x92   :  { %v60_v32 = vmul.f32 %v40_v26, %v40_v26  ;;  %v62_v38 = vmul.f32 %v42_v28, %v42_v28  ;;  %v72_v56 = vsub.f32 %v564_v1, %v40_v26  ;;  %v74_v5 = vsub.f32 %v559_v0, %v42_v28 }
  0x93   :  { %v39_v24 = vpop.xlane.xlu1 %38  ;;  %v35_v25 = vpop.xlane.xlu0 %34 }
  0x94   :  { %v41_v27 = vmul.f32 0.03125, %v35_v25  ;;  %v43_v29 = vmul.f32 0.03125, %v39_v24 }
  0x96   :  { %v61_v33 = vmul.f32 %v41_v27, %v41_v27  ;;  %v63_v39 = vmul.f32 %v43_v29, %v43_v29  ;;  %v73_v54 = vsub.f32 %v576_v3, %v41_v27  ;;  %v75_v62 = vsub.f32 %v569_v2, %v43_v29 }
  0x97   :  { %v51_v30 = vpop.xlane.xlu1 %50  ;;  %v49_v31 = vpop.xlane.xlu0 %48 }
  0x98   :  { %v57_v34 = vmul.f32 0.03125, %v51_v30  ;;  %v56_v35 = vmul.f32 0.03125, %v49_v31 }
  0x9a   :  { %v65_v36 = vsub.f32 %v57_v34, %v61_v33  ;;  %v64_v37 = vsub.f32 %v56_v35, %v60_v32  ;;  %v393_v35 = vld [vmem:[%s674_s6] ss:$0 sm:$0xff]  ;;  %s489_s6 = scalar_lea.vmem %s372_s20, 512 }
  0x9b   :  { %v55_v40 = vpop.xlane.xlu1 %54  ;;  %v53_v41 = vpop.xlane.xlu0 %52  ;;  %p490_p0 = scmp.ne.s32.totalorder %s372_s20, %s489_s6  ;;  %p495_p2 = scmp.lt.s32.totalorder %s489_s6, %s489_s6 }
  0x9c   :  { %v69_v42 = vmax.f32 %v65_v36, 0.0  ;;  %v68_v43 = vmax.f32 %v64_v37, 0.0  ;;  %v59_v44 = vmul.f32 0.03125, %v55_v40  ;;  %v58_v45 = vmul.f32 0.03125, %v53_v41 }
  0x9d   :  { %p496_p3 = por %p495_p2, %p494_p1 }
  0x9e   :  { %v77_v46 = vadd.f32 1e-05, %v69_v42  ;;  %v76_v47 = vadd.f32 1e-05, %v68_v43  ;;  %v67_v48 = vsub.f32 %v59_v44, %v63_v39  ;;  %v66_v49 = vsub.f32 %v58_v45, %v62_v38 }
  0x9f   :  { %p497_p4 = pnand %p496_p3, %p490_p0 }
  0xa0   :  { %481 = vrsqrt.f32 %v77_v46  ;;  %v71_v50 = vmax.f32 %v67_v48, 0.0  ;;  %v70_v51 = vmax.f32 %v66_v49, 0.0 }
  0xa1   :  { %483 = vrsqrt.f32 %v76_v47 }
  0xa2   :  { %v79_v52 = vadd.f32 1e-05, %v71_v50  ;;  %v78_v53 = vadd.f32 1e-05, %v70_v51 }
  0xa4   :  { %485 = vrsqrt.f32 %v79_v52 }
  0xa5   :  { %487 = vrsqrt.f32 %v78_v53 }
  0xaa   :  { %v482_v55 = vpop.eup %481 }
  0xab   :  { %v484_v58 = vpop.eup %483  ;;  %v85_v59 = vmul.f32 %v482_v55, %v73_v54 }
  0xac   :  { %v84_v60 = vmul.f32 %v484_v58, %v72_v56 }
  0xad   :  { %v96_v63 = vmul.f32 %v382_v57, %v85_v59 }
  0xae   :  { %v486_v4 = vpop.eup %485  ;;  %v95_v6 = vmul.f32 %v382_v57, %v84_v60 }
  0xaf   :  { %v488_v7 = vpop.eup %487  ;;  %v107_v8 = vadd.f32 %v383_v61, %v96_v63  ;;  %v87_v9 = vmul.f32 %v486_v4, %v75_v62 }
  0xb0   :  { %v106_v10 = vadd.f32 %v383_v61, %v95_v6  ;;  %v86_v11 = vmul.f32 %v488_v7, %v74_v5 }
  0xb1   :  { %v98_v12 = vmul.f32 %v382_v57, %v87_v9 }
  0xb2   :  { %v110_v13 = vpack.c.bf16 %v107_v8, %v106_v10  ;;  %v97_v14 = vmul.f32 %v382_v57, %v86_v11 }
  0xb3   :  { %v109_v15 = vadd.f32 %v383_v61, %v98_v12 }
  0xb4   :  { %438 = vmatprep.mubr.bf16.mxu0 %v110_v13  ;;  %v108_v16 = vadd.f32 %v383_v61, %v97_v14 }
  0xb6   :  { %v111_v17 = vpack.c.bf16 %v109_v15, %v108_v16 }
  0xb8   :  { %439 = vmatmul.mubr.bf16.vlgmr.msra.gmra.mrb[0].mxu0 %v111_v17 }
 0x18b   :  { %v440_v21 = vpop.f32.mrb[0].mxu0 }
 0x18c   :  { %v226_v22 = vadd.f32 %v440_v21, %v384_v20  ;;  %v217_v23 = vpop.f32.mrb[1].mxu0 }
 0x18d   :  { %v218_v24 = vadd.f32 %v384_v20, %v217_v23  ;;  %v441_v25 = vpop.f32.mrb[2].mxu0 }
 0x18e   :  { %v229_v26 = vadd.f32 %v441_v25, %v384_v20  ;;  %v220_v27 = vpop.f32.mrb[3].mxu0  ;;  %v234_v29 = vmax.f32 %v226_v22, 0.0 }
 0x18f   :  { %v221_v28 = vadd.f32 %v384_v20, %v220_v27  ;;  %v232_v31 = vmax.f32 %v218_v24, 0.0 }
 0x190   :  { %v235_v30 = vmax.f32 %v229_v26, 0.0 }
 0x191   :  { %v233_v32 = vmax.f32 %v221_v28, 0.0 }
 0x192   :  { %v237_v33 = vpack.c.bf16 %v235_v30, %v234_v29 }
 0x193   :  { %v236_v34 = vpack.c.bf16 %v233_v32, %v232_v31 }
 0x195   :  { %458 = vmatprep.mubr.bf16.mxu1 %v236_v34 }
 0x196   :  { %459 = vmatmul.mubr.bf16.vlgmr.msra.gmra.mrb[0].mxu1 %v237_v33 }
 0x269   :  { %v460_v36 = vpop.f32.mrb[0].mxu1 }
 0x26a   :  { %v352_v37 = vadd.f32 %v460_v36, %v393_v35  ;;  %v343_v38 = vpop.f32.mrb[1].mxu1 }
 0x26b   :  { %v344_v39 = vadd.f32 %v393_v35, %v343_v38  ;;  %v461_v40 = vpop.f32.mrb[2].mxu1 }
 0x26c   :  { %v360_v41 = vadd.f32 %v352_v37, %v559_v0  ;;  %v355_v42 = vadd.f32 %v461_v40, %v393_v35  ;;  %v346_v43 = vpop.f32.mrb[3].mxu1 }
 0x26d   :  { %v358_v44 = vadd.f32 %v344_v39, %v564_v1  ;;  %v347_v45 = vadd.f32 %v393_v35, %v346_v43 }
 0x26e   :  { %364 = vst [vmem:[#allocation2 + $0x10] sm:$0xff] %v360_v41  ;;  %v361_v46 = vadd.f32 %v355_v42, %v569_v2 }
 0x26f   :  { %362 = vst [vmem:[#allocation2] sm:$0xff] %v358_v44  ;;  %v359_v47 = vadd.f32 %v347_v45, %v576_v3 }
 0x270   :  { %365 = vst [vmem:[#allocation2 + $0x18] sm:$0xff] %v361_v46 }
 0x271   :  { %363 = vst [vmem:[#allocation2 + $0x8] sm:$0xff] %v359_v47 }
 0x272   :  { %500 = shalt.err (!%p497_p4)
}
 0x273   :  { %s501_s23 = scalar_lea.hbm %s675_s7, 512 }
 0x274   :  { %p502_p5 = scmp.ne.s32.totalorder %s675_s7, %s501_s23  ;;  %p505_p6 = scmp.lt.u32.totalorder %s501_s23, %s675_s7 }
 0x276   :  { %p507_p7 = pnand %p505_p6, %p502_p5 }
 0x278   :  { %510 = shalt.err (!%p507_p7)
}
 0x279   :  { %s514_s28 = smov 128   ;;  %s515_s29 = smov 8  }
 0x27a   :  { %377 = dma.vmem_to_hbm [thread:$0]  %s372_s20, 512, %s675_s7, [#allocation3], %s514_s28, %s514_s28, %s515_s29  }
 0x27b   :  { %511 = dma.done.wait [#allocation3], 512  }
 0x27c   :  { %512 = vsyncadd [#allocation3], 4294966784 }
 0x27d   :  { %381 = vsyncpa [#allocation3], 1 }

</bundles_post_ra>
